<compile_context>
chip_gen: v6e
topology: v6e:2x2x1
jax: 0.10.0
libtpu: 0.0.40
codegen_flags: <defaults>
</compile_context>

<pallas_src>
import math
from functools import partial

import jax
import jax.numpy as jnp
from jax.experimental import pallas as pl
from jax.experimental.pallas import tpu as pltpu


_SQRT_2_OVER_PI = math.sqrt(2.0 / math.pi)
_INV_SQRT_2 = 1.0 / math.sqrt(2.0)


def _gelu_erf(x):
    # PyTorch nn.GELU() default (approximate='none'): 0.5*x*(1+erf(x/sqrt(2)))
    return 0.5 * x * (1.0 + jax.lax.erf(x * _INV_SQRT_2))


def _gelu_tanh(x):
    # PyTorch nn.GELU(approximate='tanh'); transcendental goes to the EUP slot.
    return 0.5 * x * (1.0 + jnp.tanh(_SQRT_2_OVER_PI * (x + 0.044715 * x * x * x)))


def _mlp_kernel(x_ref, w1_ref, b1_ref, w2_ref, b2_ref, o_ref, *, gelu_tanh):
    # x_ref:  (TM, 4)   block of input rows
    # w1_ref: (4, H)    full first-layer weight (H = 256), f32
    # b1_ref: (1, H)    f32
    # w2_ref: (H, Ep)   full second-layer weight (f32 or bf16, chosen in wrapper)
    # b2_ref: (1, Ep)   f32
    # o_ref:  (TM, Ep)
    x = x_ref[...].astype(jnp.float32)
    w1 = w1_ref[...]

    # First layer (K = 4): 4 broadcast-FMAs on the VPU; avoids an MXU relayout
    # for a 4-deep matmul and keeps the MXU free for the K=256 matmul below.
    h = b1_ref[...].astype(jnp.float32)
    h = h + x[:, 0:1] * w1[0:1, :]
    h = h + x[:, 1:2] * w1[1:2, :]
    h = h + x[:, 2:3] * w1[2:3, :]
    h = h + x[:, 3:4] * w1[3:4, :]

    h = _gelu_tanh(h) if gelu_tanh else _gelu_erf(h)

    # Dominant K=256 matmul; operand dtype follows w2 (bf16 on the perf path),
    # always f32 accumulation on the MXU.
    y = jnp.dot(h.astype(w2_ref.dtype), w2_ref[...],
                preferred_element_type=jnp.float32)
    y = y + b2_ref[...].astype(jnp.float32)
    o_ref[...] = y.astype(o_ref.dtype)


def _choose_tm(N, H, Ep, out_bytes, w2_bytes, mxu_bf16, tm_max, vmem_budget_bytes):
    """Pick a row tile: largest 8/128-aligned tile within the VMEM budget,
    preferring one that divides N exactly (no pad rows, no post-kernel copy)."""
    n8 = ((N + 7) // 8) * 8
    # Resident weights (BlockSpec double-buffers even constant-index blocks).
    weight_bytes = 2 * (4 * H * 4 + H * 4 + H * Ep * w2_bytes + Ep * 4)
    # Per row: double-buffered input + output tiles, plus f32 hidden slab
    # (and a bf16 shadow of it when casting for the MXU).
    per_row = 2 * (4 * 4) + 2 * Ep * out_bytes + H * 4 + (H * 2 if mxu_bf16 else 0)
    budget_rows = max(8, (vmem_budget_bytes - weight_bytes) // per_row)

    tm = min(tm_max, budget_rows, n8)
    tm = max(8, (tm // 8) * 8)
    if tm >= 128:
        tm = (tm // 128) * 128
    if N % tm != 0:
        # Try the largest divisor of N that is a multiple of 8 and <= tm.
        d = tm - (tm % 8)
        while d >= 8:
            if N % d == 0:
                return d
            d -= 8
    return tm


def feature_encoder_forward(pos, w1, b1, w2, b2, *,
                            tm_max=2048,
                            mxu_bf16=True,
                            gelu_tanh=None,
                            out_dtype=jnp.float32,
                            vmem_budget_bytes=12 * 1024 * 1024,
                            core_parallel=False):
    """pos: (B, G, 4) float32 -> (B, G, e_o) in out_dtype.

    mxu_bf16:   bf16 operands (f32 accumulate) for the dominant K=256 matmul.
    gelu_tanh:  None -> follow mxu_bf16 (perf path uses tanh GELU, parity path erf).
    core_parallel: set True on v7x (2 TCs/chip) to shard the row grid across cores.
    """
    B, G, Fin = pos.shape
    assert Fin == 4
    H = w1.shape[1]
    E = w2.shape[1]
    if gelu_tanh is None:
        gelu_tanh = mxu_bf16

    N = B * G
    x = pos.reshape(N, Fin)

    # Lane-dense output: pad channels up to a multiple of 128 (no-op for E=384).
    Ep = ((E + 127) // 128) * 128
    if Ep != E:
        w2 = jnp.pad(w2, ((0, 0), (0, Ep - E)))
        b2 = jnp.pad(b2, ((0, Ep - E),))

    # Pre-cast W2 in the wrapper (not per grid step inside the kernel).
    if mxu_bf16:
        w2 = w2.astype(jnp.bfloat16)
    w2_bytes = jnp.dtype(w2.dtype).itemsize
    out_bytes = jnp.dtype(out_dtype).itemsize

    tm = _choose_tm(N, H, Ep, out_bytes, w2_bytes, mxu_bf16, tm_max,
                    vmem_budget_bytes)

    pad_rows = (-N) % tm
    if pad_rows:
        x = jnp.pad(x, ((0, pad_rows), (0, 0)))
    Np = N + pad_rows

    b1_2d = b1.reshape(1, H).astype(jnp.float32)
    b2_2d = b2.reshape(1, Ep).astype(jnp.float32)

    cost = pl.CostEstimate(
        flops=2 * Np * (Fin * H + H * Ep),
        transcendentals=Np * H,
        bytes_accessed=(Np * Fin * 4 + Np * Ep * out_bytes
                        + Fin * H * 4 + H * 4 + H * Ep * w2_bytes + Ep * 4),
    )

    dim_sem = (pltpu.CORE_PARALLEL if core_parallel else "parallel",)

    kernel = partial(_mlp_kernel, gelu_tanh=gelu_tanh)

    out = pl.pallas_call(
        kernel,
        out_shape=jax.ShapeDtypeStruct((Np, Ep), out_dtype),
        grid_spec=pltpu.PrefetchScalarGridSpec(
            num_scalar_prefetch=0,
            grid=(Np // tm,),
            in_specs=[
                pl.BlockSpec((tm, Fin), lambda i: (i, 0)),   # x rows
                pl.BlockSpec((Fin, H), lambda i: (0, 0)),    # W1 (resident)
                pl.BlockSpec((1, H), lambda i: (0, 0)),      # b1
                pl.BlockSpec((H, Ep), lambda i: (0, 0)),     # W2 (resident)
                pl.BlockSpec((1, Ep), lambda i: (0, 0)),     # b2
            ],
            out_specs=pl.BlockSpec((tm, Ep), lambda i: (i, 0)),
        ),
        compiler_params=pltpu.CompilerParams(dimension_semantics=dim_sem),
        cost_estimate=cost,
    )(x, w1, b1_2d, w2, b2_2d)

    if pad_rows or Ep != E:
        out = out[:N, :E]
    return out.reshape(B, G, E)


def init_params(key, encoder_channel):
    """Deterministic init mirroring nn.Linear's default (uniform +/- 1/sqrt(fan_in))."""
    e_i = 128
    H = e_i * 2            # 256
    k1, k2, k3, k4 = jax.random.split(key, 4)
    lim1 = 1.0 / math.sqrt(4.0)
    lim2 = 1.0 / math.sqrt(float(H))
    # Stored transposed w.r.t. PyTorch (in_features, out_features) for x @ W.
    w1 = jax.random.uniform(k1, (4, H), jnp.float32, -lim1, lim1)
    b1 = jax.random.uniform(k2, (H,), jnp.float32, -lim1, lim1)
    w2 = jax.random.uniform(k3, (H, encoder_channel), jnp.float32, -lim2, lim2)
    b2 = jax.random.uniform(k4, (encoder_channel,), jnp.float32, -lim2, lim2)
    return w1, b1, w2, b2


def _reference(pos, w1, b1, w2, b2):
    # PyTorch semantics: exact-erf GELU.
    h = pos @ w1 + b1
    h = _gelu_erf(h)
    return h @ w2 + b2


if __name__ == "__main__":
    key = jax.random.PRNGKey(0)
    kp, kx, kp2, kx2 = jax.random.split(key, 4)

    # --- Small config (narrow E exercises the lane-dense output padding path) ---
    encoder_channel = 32
    B, G = 2, 8
    w1, b1, w2, b2 = init_params(kp, encoder_channel)
    pos = jax.random.normal(kx, (B, G, 4), jnp.float32)
    ref = _reference(pos, w1, b1, w2, b2)

    # f32 parity path: exact erf GELU, f32 MXU -> strict parity with PyTorch.
    out_f32 = jax.block_until_ready(
        feature_encoder_forward(pos, w1, b1, w2, b2, mxu_bf16=False))
    assert out_f32.shape == (B, G, encoder_channel)
    assert jnp.allclose(out_f32, ref, atol=1e-5, rtol=1e-5), "f32 path mismatch"

    # Perf path (default): bf16 MXU operands + tanh GELU, looser tolerance.
    out_bf16 = jax.block_until_ready(
        feature_encoder_forward(pos, w1, b1, w2, b2, mxu_bf16=True))
    assert jnp.allclose(out_bf16, ref, atol=3e-2, rtol=3e-2), "bf16 path mismatch"

    # --- Larger config: multiple grid steps, E already lane-dense ---
    encoder_channel2 = 384
    B2, G2 = 4, 512                      # N = 2048 rows
    w1b, b1b, w2b, b2b = init_params(kp2, encoder_channel2)
    pos2 = jax.random.normal(kx2, (B2, G2, 4), jnp.float32)
    ref2 = _reference(pos2, w1b, b1b, w2b, b2b)
    out2 = jax.block_until_ready(
        feature_encoder_forward(pos2, w1b, b1b, w2b, b2b, tm_max=512))
    assert out2.shape == (B2, G2, encoder_channel2)
    assert jnp.allclose(out2, ref2, atol=3e-2, rtol=3e-2), "multi-tile path mismatch"

    # bf16 output writeback path (for bf16 downstream consumers).
    out3 = jax.block_until_ready(
        feature_encoder_forward(pos2, w1b, b1b, w2b, b2b, tm_max=512,
                                out_dtype=jnp.bfloat16))
    assert out3.dtype == jnp.bfloat16
    assert jnp.allclose(out3.astype(jnp.float32), ref2, atol=8e-2, rtol=8e-2), \
        "bf16-out path mismatch"

    print("KERNEL_OK")
</pallas_src>

<mosaic_0001>
module attributes {stable_mosaic.version = 11 : i64} {
  func.func @_mlp_kernel(%arg0: i32, %arg1: memref<16x4xf32, #tpu.memory_space<vmem>>, %arg2: memref<4x256xf32, #tpu.memory_space<vmem>>, %arg3: memref<1x256xf32, #tpu.memory_space<vmem>>, %arg4: memref<256x128xf32, #tpu.memory_space<vmem>>, %arg5: memref<1x128xf32, #tpu.memory_space<vmem>>, %arg6: memref<16x128xf32, #tpu.memory_space<vmem>>) attributes {dimension_semantics = [#tpu.dimension_semantics<parallel>], iteration_bounds = array<i64: 1>, scalar_prefetch = 0 : i64, scratch_operands = 0 : i64, tpu.core_type = #tpu.core_type<tc>, window_params = [{transform_indices = @transform_0, window_bounds = array<i64: 16, 4>}, {pipeline_mode = #tpu.pipeline_mode<synchronous>, transform_indices = @transform_1, window_bounds = array<i64: 4, 256>}, {pipeline_mode = #tpu.pipeline_mode<synchronous>, transform_indices = @transform_2, window_bounds = array<i64: 1, 256>}, {pipeline_mode = #tpu.pipeline_mode<synchronous>, transform_indices = @transform_3, window_bounds = array<i64: 256, 128>}, {pipeline_mode = #tpu.pipeline_mode<synchronous>, transform_indices = @transform_4, window_bounds = array<i64: 1, 128>}, {transform_indices = @transform_5, window_bounds = array<i64: 16, 128>}]} {
    %c0 = arith.constant 0 : index
    %c0_0 = arith.constant 0 : index
    %0 = vector.load %arg1[%c0, %c0_0] : memref<16x4xf32, #tpu.memory_space<vmem>>, vector<16x4xf32>
    %c0_1 = arith.constant 0 : index
    %c0_2 = arith.constant 0 : index
    %1 = vector.load %arg2[%c0_1, %c0_2] : memref<4x256xf32, #tpu.memory_space<vmem>>, vector<4x256xf32>
    %c0_3 = arith.constant 0 : index
    %c0_4 = arith.constant 0 : index
    %2 = vector.load %arg3[%c0_3, %c0_4] : memref<1x256xf32, #tpu.memory_space<vmem>>, vector<1x256xf32>
    %3 = vector.extract_strided_slice %0 {offsets = [0, 0], sizes = [16, 1], strides = [1, 1]} : vector<16x4xf32> to vector<16x1xf32>
    %4 = vector.extract_strided_slice %1 {offsets = [0, 0], sizes = [1, 256], strides = [1, 1]} : vector<4x256xf32> to vector<1x256xf32>
    %5 = vector.broadcast %3 : vector<16x1xf32> to vector<16x256xf32>
    %6 = vector.broadcast %4 : vector<1x256xf32> to vector<16x256xf32>
    %7 = arith.mulf %5, %6 : vector<16x256xf32>
    %8 = vector.broadcast %2 : vector<1x256xf32> to vector<16x256xf32>
    %9 = arith.addf %8, %7 : vector<16x256xf32>
    %10 = vector.extract_strided_slice %0 {offsets = [0, 1], sizes = [16, 1], strides = [1, 1]} : vector<16x4xf32> to vector<16x1xf32>
    %11 = vector.extract_strided_slice %1 {offsets = [1, 0], sizes = [1, 256], strides = [1, 1]} : vector<4x256xf32> to vector<1x256xf32>
    %12 = vector.broadcast %10 : vector<16x1xf32> to vector<16x256xf32>
    %13 = vector.broadcast %11 : vector<1x256xf32> to vector<16x256xf32>
    %14 = arith.mulf %12, %13 : vector<16x256xf32>
    %15 = arith.addf %9, %14 : vector<16x256xf32>
    %16 = vector.extract_strided_slice %0 {offsets = [0, 2], sizes = [16, 1], strides = [1, 1]} : vector<16x4xf32> to vector<16x1xf32>
    %17 = vector.extract_strided_slice %1 {offsets = [2, 0], sizes = [1, 256], strides = [1, 1]} : vector<4x256xf32> to vector<1x256xf32>
    %18 = vector.broadcast %16 : vector<16x1xf32> to vector<16x256xf32>
    %19 = vector.broadcast %17 : vector<1x256xf32> to vector<16x256xf32>
    %20 = arith.mulf %18, %19 : vector<16x256xf32>
    %21 = arith.addf %15, %20 : vector<16x256xf32>
    %22 = vector.extract_strided_slice %0 {offsets = [0, 3], sizes = [16, 1], strides = [1, 1]} : vector<16x4xf32> to vector<16x1xf32>
    %23 = vector.extract_strided_slice %1 {offsets = [3, 0], sizes = [1, 256], strides = [1, 1]} : vector<4x256xf32> to vector<1x256xf32>
    %24 = vector.broadcast %22 : vector<16x1xf32> to vector<16x256xf32>
    %25 = vector.broadcast %23 : vector<1x256xf32> to vector<16x256xf32>
    %26 = arith.mulf %24, %25 : vector<16x256xf32>
    %27 = arith.addf %21, %26 : vector<16x256xf32>
    %cst = arith.constant 5.000000e-01 : f32
    %28 = vector.broadcast %cst : f32 to vector<16x256xf32>
    %29 = arith.mulf %28, %27 : vector<16x256xf32>
    %cst_5 = arith.constant 0.707106769 : f32
    %30 = vector.broadcast %cst_5 : f32 to vector<16x256xf32>
    %31 = arith.mulf %27, %30 : vector<16x256xf32>
    %32 = math.erf %31 : vector<16x256xf32>
    %cst_6 = arith.constant 1.000000e+00 : f32
    %33 = vector.broadcast %cst_6 : f32 to vector<16x256xf32>
    %34 = arith.addf %33, %32 : vector<16x256xf32>
    %35 = arith.mulf %29, %34 : vector<16x256xf32>
    %c0_7 = arith.constant 0 : index
    %c0_8 = arith.constant 0 : index
    %36 = vector.load %arg4[%c0_7, %c0_8] : memref<256x128xf32, #tpu.memory_space<vmem>>, vector<256x128xf32>
    %cst_9 = arith.constant dense<0.000000e+00> : vector<16x128xf32>
    %37 = tpu.matmul %35, %36, %cst_9 {dimension_numbers = #tpu.dot_dimension_numbers<[1], [0], [0], [1], [0, 0, 1, 1], [], []>} : vector<16x256xf32>, vector<256x128xf32>, vector<16x128xf32> -> vector<16x128xf32>
    %c0_10 = arith.constant 0 : index
    %c0_11 = arith.constant 0 : index
    %38 = vector.load %arg5[%c0_10, %c0_11] : memref<1x128xf32, #tpu.memory_space<vmem>>, vector<1x128xf32>
    %39 = vector.broadcast %38 : vector<1x128xf32> to vector<16x128xf32>
    %40 = arith.addf %37, %39 : vector<16x128xf32>
    %c0_12 = arith.constant 0 : index
    %c0_13 = arith.constant 0 : index
    %41 = vector.load %arg6[%c0_12, %c0_13] : memref<16x128xf32, #tpu.memory_space<vmem>>, vector<16x128xf32>
    tpu.vector_store %arg6[%c0_12, %c0_13], %40 {strides = array<i32>} : memref<16x128xf32, #tpu.memory_space<vmem>>, vector<16x128xf32>,
    return
  }
  func.func @transform_0(%arg0: i32) -> (i32, i32) {
    %c0_i32 = arith.constant 0 : i32
    %c0_i32_0 = arith.constant 0 : i32
    return %arg0, %c0_i32 : i32, i32
  }
  func.func @transform_1(%arg0: i32) -> (i32, i32) {
    %c0_i32 = arith.constant 0 : i32
    %c0_i32_0 = arith.constant 0 : i32
    %c0_i32_1 = arith.constant 0 : i32
    return %c0_i32, %c0_i32_0 : i32, i32
  }
  func.func @transform_2(%arg0: i32) -> (i32, i32) {
    %c0_i32 = arith.constant 0 : i32
    %c0_i32_0 = arith.constant 0 : i32
    %c0_i32_1 = arith.constant 0 : i32
    return %c0_i32, %c0_i32_0 : i32, i32
  }
  func.func @transform_3(%arg0: i32) -> (i32, i32) {
    %c0_i32 = arith.constant 0 : i32
    %c0_i32_0 = arith.constant 0 : i32
    %c0_i32_1 = arith.constant 0 : i32
    return %c0_i32, %c0_i32_0 : i32, i32
  }
  func.func @transform_4(%arg0: i32) -> (i32, i32) {
    %c0_i32 = arith.constant 0 : i32
    %c0_i32_0 = arith.constant 0 : i32
    %c0_i32_1 = arith.constant 0 : i32
    return %c0_i32, %c0_i32_0 : i32, i32
  }
  func.func @transform_5(%arg0: i32) -> (i32, i32) {
    %c0_i32 = arith.constant 0 : i32
    %c0_i32_0 = arith.constant 0 : i32
    return %arg0, %c0_i32 : i32, i32
  }
}

</mosaic_0001>

<bundles_post_ra>
// kernel: tpu_custom_call.1
= control target key start
LH: loop header
LB: loop body
LE: loop exit
PB: predicated region body
PF: predicated region fallthrough
CT: control target
= control target key end

     0   :  { %10 = vsyncpa [#allocation3], 0  ;;  %s544_s0 = inlined_call_operand.vmem [shape: f32[16,4], index: 0, kind: input, shape index: {}]   ;;  %s545_s1 = inlined_call_operand.vmem [shape: f32[4,256], index: 1, kind: input, shape index: {}]   ;;  %s546_s2 = inlined_call_operand.vmem [shape: f32[1,256], index: 2, kind: input, shape index: {}]   ;;  %s547_s3 = inlined_call_operand.hbm [shape: f32[256,128], index: 3, kind: input, shape index: {}]   ;;  %s548_s4 = inlined_call_operand.vmem [shape: f32[1,128], index: 4, kind: input, shape index: {}]   ;;  %s549_s5 = inlined_call_operand.hbm [shape: f32[16,128], index: 5, kind: output, shape index: {}]  }
   0x1   :  { %11 = vsyncpa [#allocation4], 0  ;;  %s479_s18 = smov [#allocation2]  }
   0x2   :  { %s23_s19 = sshll.u32 %s479_s18, 4  ;;  %s24_s19 = int_to_ptr.vmem [resolvable:$true] %s23_s19 }
   0x3   :  { %s443_s20 = scalar_lea.vmem %s24_s19, 4096  ;;  %p448_p1 = scmp.lt.s32.totalorder %s24_s19, %s24_s19 }
   0x4   :  { %p444_p0 = scmp.ne.s32.totalorder %s24_s19, %s443_s20  ;;  %p449_p2 = scmp.lt.s32.totalorder %s443_s20, %s443_s20 }
   0x6   :  { %p450_p3 = por %p449_p2, %p448_p1 }
   0x8   :  { %p451_p4 = pnand %p450_p3, %p444_p0 }
   0xa   :  { %454 = shalt.err (!%p451_p4)
}
   0xb   :  { %s480_s21 = smov 128   ;;  %s481_s22 = smov 8  }
   0xc   :  { %29 = dma.hbm_to_vmem [thread:$0]  %s547_s3, 4096, %s24_s19, [#allocation3], %s480_s21, %s480_s21, %s481_s22  }
   0xd   :  { %475 = dma.done.wait [#allocation3], 4096  }
   0xe   :  { %476 = vsyncadd [#allocation3], 4294963200  ;;  %v482_v0 = vmov 1   ;;  %v483_v1 = vmov 0   ;;  %v35_v2 = vld [vmem:[%s544_s0] sm:$0xff]  ;;  %v36_v3 = vld [vmem:[%s544_s0 + $0x8] sm:$0xff]  ;;  %v50_v38 = vlaneseq }
   0xf   :  { %422 = vset.pattern.permute.xlu1 %v482_v0  ;;  %421 = vset.pattern.permute.xlu0 %v483_v1  ;;  %v240_v4 = vld [vmem:[#allocation2 + $0xf8] sm:$0xff]  ;;  %v239_v6 = vld [vmem:[#allocation2 + $0xf0] sm:$0xff]  ;;  %v238_v8 = vld [vmem:[#allocation2 + $0xe8] sm:$0xff]  ;;  %v484_v9 = vmov 2   ;;  %v485_v13 = vmov 3   ;;  %s486_s6 = smov [#allocation5]  }
  0x10   :  { %88 = vperm.xlu1 %422, %v35_v2   ;;  %41 = vperm.xlu0 %421, %v35_v2   ;;  %v224_v5 = vld [vmem:[#allocation2 + $0x78] sm:$0xff]  ;;  %v223_v7 = vld [vmem:[#allocation2 + $0x70] sm:$0xff]  ;;  %v222_v10 = vld [vmem:[#allocation2 + $0x68] sm:$0xff]  ;;  %v51_v39 = vshrl.u32 %v50_v38, 7  ;;  %s330_s7 = sshll.u32 %s486_s6, 4  ;;  %s331_s7 = int_to_ptr.vmem [resolvable:$true] %s330_s7 }
  0x11   :  { %343 = vmatprep.subr.mxu0 %v240_v4  ;;  %381 = vmatprep.subr.mxu1 %v240_v4  ;;  %v237_v11 = vld [vmem:[#allocation2 + $0xe0] sm:$0xff]  ;;  %v236_v14 = vld [vmem:[#allocation2 + $0xd8] sm:$0xff]  ;;  %v235_v16 = vld [vmem:[#allocation2 + $0xd0] sm:$0xff]  ;;  %s455_s8 = scalar_lea.vmem %s331_s7, 256  ;;  %p460_p6 = scmp.lt.s32.totalorder %s331_s7, %s331_s7 }
  0x12   :  { %344 = vmatpush3.msra.mxu0 %v224_v5  ;;  %397 = vmatpush3.msra.mxu1 %v224_v5  ;;  %v221_v12 = vld [vmem:[#allocation2 + $0x60] sm:$0xff]  ;;  %v220_v15 = vld [vmem:[#allocation2 + $0x58] sm:$0xff]  ;;  %v219_v17 = vld [vmem:[#allocation2 + $0x50] sm:$0xff]  ;;  %v52_v40 = vsub.s32 0, %v51_v39  ;;  %v56_v41 = vsub.s32 4, %v51_v39  ;;  %v79_v45 = vsub.s32 1, %v51_v39  ;;  %p456_p5 = scmp.ne.s32.totalorder %s331_s7, %s455_s8  ;;  %p461_p7 = scmp.lt.s32.totalorder %s455_s8, %s455_s8 }
  0x13   :  { %345 = vmatprep.subr.mxu0 %v239_v6  ;;  %382 = vmatprep.subr.mxu1 %v239_v6  ;;  %v234_v18 = vld [vmem:[#allocation2 + $0xc8] sm:$0xff]  ;;  %v233_v20 = vld [vmem:[#allocation2 + $0xc0] sm:$0xff]  ;;  %v232_v22 = vld [vmem:[#allocation2 + $0xb8] sm:$0xff]  ;;  %v101_v46 = vsub.s32 5, %v51_v39  ;;  %v131_v47 = vsub.s32 2, %v51_v39  ;;  %v135_v48 = vsub.s32 6, %v51_v39 }
  0x14   :  { %92 = vperm.xlu1 %422, %v36_v3   ;;  %46 = vperm.xlu0 %421, %v36_v3   ;;  %v218_v19 = vld [vmem:[#allocation2 + $0x48] sm:$0xff]  ;;  %v217_v21 = vld [vmem:[#allocation2 + $0x40] sm:$0xff]  ;;  %v216_v23 = vld [vmem:[#allocation2 + $0x38] sm:$0xff]  ;;  %v165_v58 = vsub.s32 3, %v51_v39  ;;  %v169_v59 = vsub.s32 7, %v51_v39  ;;  %p462_p8 = por %p461_p7, %p460_p6 }
  0x15   :  { %346 = vmatpush3.msra.mxu0 %v223_v7  ;;  %398 = vmatpush3.msra.mxu1 %v223_v7  ;;  %v231_v24 = vld [vmem:[#allocation2 + $0xb0] sm:$0xff]  ;;  %v230_v26 = vld [vmem:[#allocation2 + $0xa8] sm:$0xff]  ;;  %v229_v28 = vld [vmem:[#allocation2 + $0xa0] sm:$0xff] }
  0x16   :  { %347 = vmatprep.subr.mxu0 %v238_v8  ;;  %383 = vmatprep.subr.mxu1 %v238_v8  ;;  %v215_v25 = vld [vmem:[#allocation2 + $0x30] sm:$0xff]  ;;  %v214_v27 = vld [vmem:[#allocation2 + $0x28] sm:$0xff]  ;;  %v213_v29 = vld [vmem:[#allocation2 + $0x20] sm:$0xff]  ;;  %p463_p9 = pnand %p462_p8, %p456_p5 }
  0x17   :  { %348 = vmatpush3.msra.mxu0 %v222_v10  ;;  %399 = vmatpush3.msra.mxu1 %v222_v10  ;;  %v228_v30 = vld [vmem:[#allocation2 + $0x98] sm:$0xff]  ;;  %v227_v32 = vld [vmem:[#allocation2 + $0x90] sm:$0xff]  ;;  %v226_v34 = vld [vmem:[#allocation2 + $0x88] sm:$0xff] }
  0x18   :  { %424 = vset.pattern.permute.xlu1 %v484_v9  ;;  %423 = vset.pattern.permute.xlu0 %v484_v9  ;;  %v212_v31 = vld [vmem:[#allocation2 + $0x18] sm:$0xff]  ;;  %v211_v33 = vld [vmem:[#allocation2 + $0x10] sm:$0xff]  ;;  %v210_v35 = vld [vmem:[#allocation2 + $0x8] sm:$0xff] }
  0x19   :  { %126 = vperm.xlu1 %424, %v36_v3   ;;  %122 = vperm.xlu0 %423, %v35_v2   ;;  %v225_v36 = vld [vmem:[#allocation2 + $0x80] sm:$0xff] }
  0x1a   :  { %349 = vmatprep.subr.mxu0 %v237_v11  ;;  %384 = vmatprep.subr.mxu1 %v237_v11  ;;  %v209_v37 = vld [vmem:[#allocation2] sm:$0xff] }
  0x1b   :  { %350 = vmatpush3.msra.mxu0 %v221_v12  ;;  %400 = vmatpush3.msra.mxu1 %v221_v12  ;;  %v37_v42 = vld [vmem:[%s545_s1] sm:$0xff] }
  0x1c   :  { %351 = vmatprep.subr.mxu0 %v236_v14  ;;  %385 = vmatprep.subr.mxu1 %v236_v14  ;;  %v53_v43 = vrot.slane %v37_v42, %v52_v40  ;;  %v57_v44 = vrot.slane %v37_v42, %v56_v41  ;;  %v98_v53 = vrot.slane %v37_v42, %v79_v45  ;;  %v38_v55 = vld [vmem:[%s546_s2] sm:$0x3] }
  0x1d   :  { %425 = vset.pattern.permute.xlu1 %v485_v13  ;;  %426 = vset.pattern.permute.xlu0 %v485_v13  ;;  %v102_v54 = vrot.slane %v37_v42, %v101_v46  ;;  %v132_v56 = vrot.slane %v37_v42, %v131_v47  ;;  %v136_v57 = vrot.slane %v37_v42, %v135_v48 }
  0x1e   :  { %156 = vperm.xlu1 %425, %v35_v2   ;;  %160 = vperm.xlu0 %426, %v36_v3   ;;  %v63_v50 = vrot.slane %v53_v43, %v52_v40  ;;  %v67_v51 = vrot.slane %v57_v44, %v52_v40  ;;  %v76_v60 = vrot.slane %v38_v55, %v52_v40 }
  0x1f   :  { %352 = vmatpush3.msra.mxu0 %v220_v15  ;;  %401 = vmatpush3.msra.mxu1 %v220_v15  ;;  %v80_v61 = vrot.slane %v38_v55, %v79_v45  ;;  %v108_v2 = vrot.slane %v98_v53, %v79_v45  ;;  %v112_v3 = vrot.slane %v102_v54, %v79_v45 }
  0x20   :  { %353 = vmatprep.subr.mxu0 %v235_v16  ;;  %386 = vmatprep.subr.mxu1 %v235_v16  ;;  %v142_v6 = vrot.slane %v132_v56, %v131_v47  ;;  %v146_v7 = vrot.slane %v136_v57, %v131_v47  ;;  %v166_v8 = vrot.slane %v37_v42, %v165_v58 }
  0x21   :  { %354 = vmatpush3.msra.mxu0 %v219_v17  ;;  %402 = vmatpush3.msra.mxu1 %v219_v17  ;;  %v170_v9 = vrot.slane %v37_v42, %v169_v59 }
  0x22   :  { %355 = vmatprep.subr.mxu0 %v234_v18  ;;  %387 = vmatprep.subr.mxu1 %v234_v18 }
  0x23   :  { %356 = vmatpush3.msra.mxu0 %v218_v19  ;;  %403 = vmatpush3.msra.mxu1 %v218_v19 }
  0x24   :  { %357 = vmatprep.subr.mxu0 %v233_v20  ;;  %388 = vmatprep.subr.mxu1 %v233_v20 }
  0x25   :  { %358 = vmatpush3.msra.mxu0 %v217_v21  ;;  %404 = vmatpush3.msra.mxu1 %v217_v21 }
  0x26   :  { %359 = vmatprep.subr.mxu0 %v232_v22  ;;  %389 = vmatprep.subr.mxu1 %v232_v22 }
  0x27   :  { %360 = vmatpush3.msra.mxu0 %v216_v23  ;;  %405 = vmatpush3.msra.mxu1 %v216_v23 }
  0x28   :  { %361 = vmatprep.subr.mxu0 %v231_v24  ;;  %390 = vmatprep.subr.mxu1 %v231_v24 }
  0x29   :  { %362 = vmatpush3.msra.mxu0 %v215_v25  ;;  %406 = vmatpush3.msra.mxu1 %v215_v25 }
  0x2a   :  { %363 = vmatprep.subr.mxu0 %v230_v26  ;;  %391 = vmatprep.subr.mxu1 %v230_v26  ;;  %v176_v26 = vrot.slane %v166_v8, %v165_v58 }
  0x2b   :  { %364 = vmatpush3.msra.mxu0 %v214_v27  ;;  %407 = vmatpush3.msra.mxu1 %v214_v27  ;;  %v180_v27 = vrot.slane %v170_v9, %v165_v58 }
  0x2c   :  { %365 = vmatprep.subr.mxu0 %v229_v28  ;;  %392 = vmatprep.subr.mxu1 %v229_v28 }
  0x2d   :  { %366 = vmatpush3.msra.mxu0 %v213_v29  ;;  %408 = vmatpush3.msra.mxu1 %v213_v29 }
  0x2e   :  { %367 = vmatprep.subr.mxu0 %v228_v30  ;;  %393 = vmatprep.subr.mxu1 %v228_v30 }
  0x2f   :  { %368 = vmatpush3.msra.mxu0 %v212_v31  ;;  %409 = vmatpush3.msra.mxu1 %v212_v31 }
  0x30   :  { %369 = vmatprep.subr.mxu0 %v227_v32  ;;  %394 = vmatprep.subr.mxu1 %v227_v32 }
  0x31   :  { %370 = vmatpush3.msra.mxu0 %v211_v33  ;;  %410 = vmatpush3.msra.mxu1 %v211_v33 }
  0x32   :  { %371 = vmatprep.subr.mxu0 %v226_v34  ;;  %395 = vmatprep.subr.mxu1 %v226_v34 }
  0x33   :  { %372 = vmatpush3.msra.mxu0 %v210_v35  ;;  %411 = vmatpush3.msra.mxu1 %v210_v35 }
  0x34   :  { %373 = vmatprep.subr.mxu0 %v225_v36  ;;  %396 = vmatprep.subr.mxu1 %v225_v36 }
  0x35   :  { %374 = vmatpush3.msra.mxu0 %v209_v37  ;;  %412 = vmatpush3.msra.mxu1 %v209_v37 }
  0x8b   :  { %v89_v49 = vpop.permute.xlu1 %88  ;;  %v42_v52 = vpop.permute.xlu0 %41 }
  0x8c   :  { %v68_v62 = vmul.f32 %v63_v50, %v42_v52  ;;  %v69_v63 = vmul.f32 %v67_v51, %v42_v52  ;;  %v113_v16 = vmul.f32 %v108_v2, %v89_v49  ;;  %v114_v17 = vmul.f32 %v112_v3, %v89_v49 }
  0x8e   :  { %v83_v14 = vadd.f32 %v76_v60, %v68_v62  ;;  %v84_v15 = vadd.f32 %v80_v61, %v69_v63 }
  0x8f   :  { %v93_v0 = vpop.permute.xlu1 %92  ;;  %v47_v1 = vpop.permute.xlu0 %46 }
  0x90   :  { %v70_v4 = vmul.f32 %v63_v50, %v47_v1  ;;  %v71_v5 = vmul.f32 %v67_v51, %v47_v1  ;;  %v115_v10 = vmul.f32 %v108_v2, %v93_v0  ;;  %v116_v11 = vmul.f32 %v112_v3, %v93_v0  ;;  %v342_v2 = vld [vmem:[%s548_s4] ss:$0 sm:$0xff] }
  0x91   :  { %v117_v28 = vadd.f32 %v113_v16, %v83_v14  ;;  %v118_v29 = vadd.f32 %v114_v17, %v84_v15 }
  0x92   :  { %v85_v12 = vadd.f32 %v76_v60, %v70_v4  ;;  %v86_v13 = vadd.f32 %v80_v61, %v71_v5 }
  0x94   :  { %v127_v18 = vpop.permute.xlu1 %126  ;;  %v119_v19 = vadd.f32 %v115_v10, %v85_v12  ;;  %v120_v20 = vadd.f32 %v116_v11, %v86_v13  ;;  %v123_v21 = vpop.permute.xlu0 %122 }
  0x95   :  { %v149_v22 = vmul.f32 %v142_v6, %v127_v18  ;;  %v150_v23 = vmul.f32 %v146_v7, %v127_v18  ;;  %v147_v24 = vmul.f32 %v142_v6, %v123_v21  ;;  %v148_v25 = vmul.f32 %v146_v7, %v123_v21 }
  0x97   :  { %v153_v30 = vadd.f32 %v149_v22, %v119_v19  ;;  %v154_v31 = vadd.f32 %v150_v23, %v120_v20  ;;  %v151_v32 = vadd.f32 %v147_v24, %v117_v28  ;;  %v152_v33 = vadd.f32 %v148_v25, %v118_v29 }
  0x99   :  { %v157_v34 = vpop.permute.xlu1 %156  ;;  %v161_v35 = vpop.permute.xlu0 %160 }
  0x9a   :  { %v181_v36 = vmul.f32 %v176_v26, %v157_v34  ;;  %v182_v37 = vmul.f32 %v180_v27, %v157_v34  ;;  %v183_v38 = vmul.f32 %v176_v26, %v161_v35  ;;  %v184_v39 = vmul.f32 %v180_v27, %v161_v35 }
  0x9c   :  { %v185_v40 = vadd.f32 %v181_v36, %v151_v32  ;;  %v186_v41 = vadd.f32 %v182_v37, %v152_v33  ;;  %v187_v42 = vadd.f32 %v183_v38, %v153_v30  ;;  %v188_v43 = vadd.f32 %v184_v39, %v154_v31 }
  0x9e   :  { %v193_v44 = vmul.f32 0.70710677, %v185_v40  ;;  %v194_v45 = vmul.f32 0.70710677, %v186_v41  ;;  %v195_v46 = vmul.f32 0.70710677, %v187_v42 }
  0x9f   :  { %v196_v47 = vmul.f32 0.70710677, %v188_v43  ;;  %v189_v50 = vmul.f32 0.5, %v185_v40  ;;  %v190_v53 = vmul.f32 0.5, %v186_v41  ;;  %v191_v56 = vmul.f32 0.5, %v187_v42 }
  0xa0   :  { %427 = verf.f32 %v193_v44  ;;  %v192_v60 = vmul.f32 0.5, %v188_v43 }
  0xa1   :  { %429 = verf.f32 %v194_v45 }
  0xa2   :  { %431 = verf.f32 %v195_v46 }
  0xa3   :  { %433 = verf.f32 %v196_v47 }
  0xad   :  { %v428_v48 = vpop.eup %427 }
  0xae   :  { %v430_v49 = vpop.eup %429  ;;  %v201_v51 = vadd.f32 1.0, %v428_v48 }
  0xaf   :  { %v432_v52 = vpop.eup %431  ;;  %v202_v54 = vadd.f32 1.0, %v430_v49 }
  0xb0   :  { %v434_v55 = vpop.eup %433  ;;  %v205_v57 = vmul.f32 %v201_v51, %v189_v50  ;;  %v203_v58 = vadd.f32 1.0, %v432_v52 }
  0xb1   :  { %v206_v59 = vmul.f32 %v202_v54, %v190_v53  ;;  %v204_v61 = vadd.f32 1.0, %v434_v55 }
  0xb2   :  { %v207_v62 = vmul.f32 %v203_v58, %v191_v56 }
  0xb3   :  { %312 = vmatprep.mubr.f32.mxu0 %v206_v59  ;;  %v208_v63 = vmul.f32 %v204_v61, %v192_v60 }
  0xb4   :  { %313 = vmatmul.mubr.f32.vlgmr.msra.gmra.mxu0 %v205_v57 }
  0xb5   :  { %317 = vmatprep.mubr.f32.mxu1 %v208_v63 }
  0xb6   :  { %318 = vmatmul.mubr.f32.vlgmr.msra.gmra.mxu1 %v207_v62 }
 0x174   :  { %v375_v0 = vpop.f32.mrf.mxu0 }
 0x176   :  { %v378_v1 = vpop.f32.mrf.mxu1  ;;  %v376_v3 = vpop.f32.mrf.mxu0 }
 0x177   :  { %v377_v4 = vadd.f32 %v376_v3, %v375_v0 }
 0x178   :  { %v379_v5 = vpop.f32.mrf.mxu1 }
 0x179   :  { %v315_v6 = vadd.f32 %v377_v4, %v342_v2  ;;  %v380_v7 = vadd.f32 %v379_v5, %v378_v1 }
 0x17b   :  { %323 = vst [vmem:[#allocation5] sm:$0xff] %v315_v6  ;;  %v320_v8 = vadd.f32 %v380_v7, %v342_v2 }
 0x17d   :  { %324 = vst [vmem:[#allocation5 + $0x8] sm:$0xff] %v320_v8 }
 0x17e   :  { %466 = shalt.err (!%p463_p9)
}
 0x17f   :  { %336 = dma.vmem_to_hbm [thread:$0]  %s331_s7, 256, %s549_s5, [#allocation4], %s480_s21, %s480_s21, %s481_s22  }
 0x180   :  { %477 = dma.done.wait [#allocation4], 256  }
 0x181   :  { %478 = vsyncadd [#allocation4], 4294967040 }
 0x182   :  { %340 = vsyncpa [#allocation3], 1 }
 0x183   :  { %341 = vsyncpa [#allocation4], 1 }

</bundles_post_ra>
